<compile_context>
chip_gen: v5e
topology: v5e:2x2
jax: 0.10.0
libtpu: 0.0.40
codegen_flags: <defaults>
</compile_context>

<pallas_src>
import functools

import jax
import jax.numpy as jnp
from jax.experimental import pallas as pl
from jax.experimental.pallas import tpu as pltpu


def _round_up(x: int, m: int) -> int:
    return ((x + m - 1) // m) * m


# ----------------------------- kernel bodies ------------------------------ #

def _mm_kernel_acc_out(x_ref, w_ref, o_ref, *, compute_dtype=None):
    """fp32 output: accumulate straight into the resident output block."""
    x = x_ref[...]
    w = w_ref[...]
    if compute_dtype is not None:
        x = x.astype(compute_dtype)
        w = w.astype(compute_dtype)
    part = jnp.dot(x, w, preferred_element_type=jnp.float32)

    k = pl.program_id(2)

    @pl.when(k == 0)
    def _():
        o_ref[...] = part            # first step: direct store (no zero pass)

    @pl.when(k != 0)
    def _():
        o_ref[...] += part


def _mm_kernel_scratch(x_ref, w_ref, o_ref, acc_ref, *, compute_dtype=None):
    """Narrow output dtype: fp32 scratch accumulator, cast on the last K step."""
    x = x_ref[...]
    w = w_ref[...]
    if compute_dtype is not None:
        x = x.astype(compute_dtype)
        w = w.astype(compute_dtype)
    part = jnp.dot(x, w, preferred_element_type=jnp.float32)

    k = pl.program_id(2)

    @pl.when(k == 0)
    def _():
        acc_ref[...] = part

    @pl.when(k != 0)
    def _():
        acc_ref[...] += part

    @pl.when(k == pl.num_programs(2) - 1)
    def _():
        o_ref[...] = acc_ref[...].astype(o_ref.dtype)


# ----------------------------- tiling helpers ----------------------------- #

def _vmem_budget_bytes():
    """(physical_vmem_bytes, working-set budget) for the current generation."""
    try:
        cap = int(pltpu.get_tpu_info().vmem_capacity_bytes)
    except Exception:
        cap = 64 << 20                      # conservative fallback (v7x per-TC)
    if cap >= (100 << 20):                  # v5e / v6e: 128 MiB physical VMEM
        return cap, 96 << 20
    return cap, 48 << 20                    # v7x: 64 MiB per TC -> keep headroom


def _pick_tile(dim: int, cap: int, align: int) -> int:
    """Largest tile <= cap that covers dim in one block or divides it exactly
    (so the big weight never needs padding); falls back to cap (+padding)."""
    if dim <= cap:
        return _round_up(dim, align)
    t = (cap // align) * align
    while t >= align:
        if dim % t == 0:
            return t
        t -= align
    return (cap // align) * align


def _working_set_bytes(tm, tn, tk, in_item, out_item, w_bufs, use_scratch):
    return (2 * tm * tk * in_item           # x (double-buffered)
            + w_bufs * tk * tn * in_item    # w
            + 2 * tm * tn * out_item        # output (double-buffered)
            + (tm * tn * 4 if use_scratch else 0))


# ------------------------------ 2-D driver --------------------------------- #

def _tied_transpose_2d(x, w, *, tm=None, tn=None, tk=None, compute_dtype=None):
    """out = x @ w  with x: (M, K), w: (K, N)  ->  (M, N)."""
    M, K = x.shape
    K2, N = w.shape
    assert K == K2, f"inner dims mismatch: {K} vs {K2}"

    out_dtype = x.dtype
    in_item = jnp.dtype(x.dtype).itemsize
    out_item = jnp.dtype(out_dtype).itemsize
    sub_min = 16 if in_item < 4 else 8          # sublane tile minimum

    vmem_cap, vmem_budget = _vmem_budget_bytes()
    big_vmem = vmem_budget >= (96 << 20)

    # ---- Tile selection: MXU-filling, lane-dense output, generation-aware. ----
    cap_m = 512
    cap_n = 2048 if big_vmem else 1024
    cap_k = 2048 if (big_vmem or in_item < 4) else 1024

    if tm is None:
        tm = _pick_tile(M, cap_m, sub_min)
    if tn is None:
        tn = _pick_tile(N, cap_n, 128)
    if tk is None:
        tk = _pick_tile(K, cap_k, 128)

    use_scratch = out_dtype != jnp.float32

    def fits(w_bufs):
        return _working_set_bytes(tm, tn, tk, in_item, out_item,
                                  w_bufs, use_scratch) <= vmem_budget

    # Shrink (tk first, then tn, then tm) until the working set fits the budget.
    while not fits(2) and tk > 256:
        tk = max(256, _round_up(tk // 2, 128))
    while not fits(2) and tn > 256:
        tn = max(256, _round_up(tn // 2, 128))
    while not fits(2) and tm > sub_min:
        tm = max(sub_min, _round_up(tm // 2, sub_min))

    M_pad, K_pad, N_pad = _round_up(M, tm), _round_up(K, tk), _round_up(N, tn)

    # v7x has 2 TensorCores sharded over the "parallel" axes: keep >= 2 parallel
    # output blocks so one core doesn't idle for small-batch inference.
    if (not big_vmem) and (M_pad // tm) * (N_pad // tn) < 2 and N_pad >= 256:
        tn = max(128, _round_up(N_pad // 2, 128))
        N_pad = _round_up(N, tn)

    # ---- Pad only what's ragged (zero K-padding contributes 0 to the dot). ----
    if (M_pad, K_pad) != (M, K):
        x = jnp.pad(x, ((0, M_pad - M), (0, K_pad - K)))
    if (K_pad, N_pad) != (K, N):
        w = jnp.pad(w, ((0, K_pad - K), (0, N_pad - N)))

    grid = (M_pad // tm, N_pad // tn, K_pad // tk)
    k_steps = grid[2]

    # In-kernel cast (no wrapper-side extra HBM pass over x / the weight).
    cd = None
    if compute_dtype is not None and jnp.dtype(compute_dtype) != jnp.dtype(x.dtype):
        cd = jnp.dtype(compute_dtype)

    if use_scratch:
        kernel = functools.partial(_mm_kernel_scratch, compute_dtype=cd)
        scratch_shapes = [pltpu.VMEM((tm, tn), jnp.float32)]
    else:
        kernel = functools.partial(_mm_kernel_acc_out, compute_dtype=cd)
        scratch_shapes = []

    # Dominant weight stream: try 3-deep buffering when VMEM allows.
    w_bufs = 2
    w_spec = pl.BlockSpec((tk, tn), lambda i, j, k: (k, j))
    if k_steps >= 3 and _working_set_bytes(tm, tn, tk, in_item, out_item,
                                           3, use_scratch) <= vmem_budget:
        try:
            w_spec = pl.BlockSpec((tk, tn), lambda i, j, k: (k, j),
                                  pipeline_mode=pl.Buffered(3))
            w_bufs = 3
        except Exception:
            w_spec = pl.BlockSpec((tk, tn), lambda i, j, k: (k, j))
            w_bufs = 2

    needed = _working_set_bytes(tm, tn, tk, in_item, out_item, w_bufs, use_scratch)
    vmem_limit_bytes = int(min(max(needed + (4 << 20), 32 << 20), vmem_cap))

    # Truthful HBM traffic estimate (includes the x / w re-read factors).
    cost = pl.CostEstimate(
        flops=2 * M_pad * N_pad * K_pad,
        transcendentals=0,
        bytes_accessed=int(
            M_pad * K_pad * in_item * (N_pad // tn)      # x re-read per j block
            + K_pad * N_pad * in_item * (M_pad // tm)    # w re-read per i block
            + M_pad * N_pad * out_item
        ),
    )

    out = pl.pallas_call(
        kernel,
        out_shape=jax.ShapeDtypeStruct((M_pad, N_pad), out_dtype),
        grid_spec=pltpu.PrefetchScalarGridSpec(
            num_scalar_prefetch=0,
            grid=grid,
            in_specs=[
                pl.BlockSpec((tm, tk), lambda i, j, k: (i, k)),
                w_spec,
            ],
            out_specs=pl.BlockSpec((tm, tn), lambda i, j, k: (i, j)),
            scratch_shapes=scratch_shapes,
        ),
        compiler_params=pltpu.CompilerParams(
            dimension_semantics=("parallel", "parallel", "arbitrary"),
            vmem_limit_bytes=vmem_limit_bytes,
        ),
        cost_estimate=cost,
    )(x, w)

    if (M_pad, N_pad) != (M, N):
        out = out[:M, :N]
    return out


# ------------------------------ public API --------------------------------- #

def tied_transpose(x, w, *, tm=None, tn=None, tk=None, compute_dtype=None):
    """TiedTranspose forward: F.linear(x, w.T, None) == x @ w.

    x: (..., d_latent)
    w: (d_latent, d_in)   -- this IS linear.weight (shape (d_latent, d_in))
    returns: (..., d_in)
    """
    d_latent = x.shape[-1]
    d_in = w.shape[1]
    lead = x.shape[:-1]
    x2 = x.reshape(-1, d_latent)
    out2 = _tied_transpose_2d(
        x2, w, tm=tm, tn=tn, tk=tk, compute_dtype=compute_dtype
    )
    return out2.reshape(*lead, d_in)


if __name__ == "__main__":
    # Shapes implied by the module: linear = nn.Linear(d_in, d_latent, bias=False)
    # weight W: (d_latent, d_in); TiedTranspose input x: (batch, d_latent).
    key = jax.random.PRNGKey(0)
    kx, kw, kx2, kw2, kx3, kw3 = jax.random.split(key, 6)

    # Case 1: nicely tiled small shapes (single-block fast path, fp32 in-place acc).
    batch, d_latent, d_in = 8, 256, 128
    x = jax.random.normal(kx, (batch, d_latent), dtype=jnp.float32)
    w = jax.random.normal(kw, (d_latent, d_in), dtype=jnp.float32) * 0.02

    out = tied_transpose(x, w)
    jax.block_until_ready(out)
    ref = x @ w
    assert out.shape == (batch, d_in)
    assert jnp.allclose(out, ref, atol=1e-4, rtol=1e-4)

    # Case 2: ragged shapes exercise the padding path (no divisibility asserts).
    b2, dl2, di2 = 7, 250, 130
    x2 = jax.random.normal(kx2, (b2, dl2), dtype=jnp.float32)
    w2 = jax.random.normal(kw2, (dl2, di2), dtype=jnp.float32) * 0.02
    out2 = tied_transpose(x2, w2)
    jax.block_until_ready(out2)
    ref2 = x2 @ w2
    assert out2.shape == (b2, di2)
    assert jnp.allclose(out2, ref2, atol=1e-4, rtol=1e-4)

    # Case 3: bf16 I/O with explicit small tiles -> multi-step K accumulation,
    # scratch-accumulator kernel and the deeper-buffered weight stream path.
    b3, dl3, di3 = 16, 512, 256
    x3 = (jax.random.normal(kx3, (b3, dl3), dtype=jnp.float32) * 0.1).astype(jnp.bfloat16)
    w3 = (jax.random.normal(kw3, (dl3, di3), dtype=jnp.float32) * 0.02).astype(jnp.bfloat16)
    out3 = tied_transpose(x3, w3, tm=16, tn=128, tk=128)
    jax.block_until_ready(out3)
    ref3 = (x3.astype(jnp.float32) @ w3.astype(jnp.float32)).astype(jnp.bfloat16)
    assert out3.shape == (b3, di3)
    assert jnp.allclose(out3.astype(jnp.float32), ref3.astype(jnp.float32),
                        atol=2e-2, rtol=2e-2)

    print("KERNEL_OK")
</pallas_src>

<mosaic_0001>
module attributes {stable_mosaic.version = 11 : i64} {
  func.func @_mm_kernel_acc_out(%arg0: i32, %arg1: i32, %arg2: i32, %arg3: memref<8x256xf32, #tpu.memory_space<vmem>>, %arg4: memref<256x128xf32, #tpu.memory_space<vmem>>, %arg5: memref<8x128xf32, #tpu.memory_space<vmem>>) attributes {dimension_semantics = [#tpu.dimension_semantics<parallel>, #tpu.dimension_semantics<parallel>, #tpu.dimension_semantics<arbitrary>], iteration_bounds = array<i64: 1, 1, 1>, scalar_prefetch = 0 : i64, scratch_operands = 0 : i64, tpu.core_type = #tpu.core_type<tc>, window_params = [{transform_indices = @transform_0, window_bounds = array<i64: 8, 256>}, {transform_indices = @transform_1, window_bounds = array<i64: 256, 128>}, {transform_indices = @transform_2, window_bounds = array<i64: 8, 128>}]} {
    %c0 = arith.constant 0 : index
    %c0_0 = arith.constant 0 : index
    %0 = vector.load %arg3[%c0, %c0_0] : memref<8x256xf32, #tpu.memory_space<vmem>>, vector<8x256xf32>
    %c0_1 = arith.constant 0 : index
    %c0_2 = arith.constant 0 : index
    %1 = vector.load %arg4[%c0_1, %c0_2] : memref<256x128xf32, #tpu.memory_space<vmem>>, vector<256x128xf32>
    %cst = arith.constant dense<0.000000e+00> : vector<8x128xf32>
    %2 = tpu.matmul %0, %1, %cst {dimension_numbers = #tpu.dot_dimension_numbers<[1], [0], [0], [1], [0, 0, 1, 1], [], []>} : vector<8x256xf32>, vector<256x128xf32>, vector<8x128xf32> -> vector<8x128xf32>
    %c0_i32 = arith.constant 0 : i32
    %3 = arith.cmpi eq, %arg2, %c0_i32 : i32
    %4 = arith.extui %3 : i1 to i32
    %c0_i32_3 = arith.constant 0 : i32
    %5 = arith.cmpi ne, %4, %c0_i32_3 : i32
    scf.if %5 {
      %c0_6 = arith.constant 0 : index
      %c0_7 = arith.constant 0 : index
      %9 = vector.load %arg5[%c0_6, %c0_7] : memref<8x128xf32, #tpu.memory_space<vmem>>, vector<8x128xf32>
      tpu.vector_store %arg5[%c0_6, %c0_7], %2 {strides = array<i32>} : memref<8x128xf32, #tpu.memory_space<vmem>>, vector<8x128xf32>,
    } else {
    }
    %c0_i32_4 = arith.constant 0 : i32
    %6 = arith.cmpi ne, %arg2, %c0_i32_4 : i32
    %7 = arith.extui %6 : i1 to i32
    %c0_i32_5 = arith.constant 0 : i32
    %8 = arith.cmpi ne, %7, %c0_i32_5 : i32
    scf.if %8 {
      %c0_6 = arith.constant 0 : index
      %c0_7 = arith.constant 0 : index
      %9 = vector.load %arg5[%c0_6, %c0_7] : memref<8x128xf32, #tpu.memory_space<vmem>>, vector<8x128xf32>
      %10 = arith.addf %9, %2 : vector<8x128xf32>
      %c0_8 = arith.constant 0 : index
      %c0_9 = arith.constant 0 : index
      %11 = vector.load %arg5[%c0_8, %c0_9] : memref<8x128xf32, #tpu.memory_space<vmem>>, vector<8x128xf32>
      tpu.vector_store %arg5[%c0_8, %c0_9], %10 {strides = array<i32>} : memref<8x128xf32, #tpu.memory_space<vmem>>, vector<8x128xf32>,
    } else {
    }
    return
  }
  func.func @transform_0(%arg0: i32, %arg1: i32, %arg2: i32) -> (i32, i32) {
    %c0_i32 = arith.constant 0 : i32
    return %arg0, %arg2 : i32, i32
  }
  func.func @transform_1(%arg0: i32, %arg1: i32, %arg2: i32) -> (i32, i32) {
    %c0_i32 = arith.constant 0 : i32
    return %arg2, %arg1 : i32, i32
  }
  func.func @transform_2(%arg0: i32, %arg1: i32, %arg2: i32) -> (i32, i32) {
    %c0_i32 = arith.constant 0 : i32
    return %arg0, %arg1 : i32, i32
  }
}

</mosaic_0001>

<bundles_post_ra>
// kernel: tpu_custom_call.1
= control target key start
LH: loop header
LB: loop body
LE: loop exit
PB: predicated region body
PF: predicated region fallthrough
CT: control target
= control target key end

     0   :  { %7 = vsyncpa [#allocation3], 0  ;;  %s258_s0 = inlined_call_operand.hbm [shape: f32[8,256], index: 0, kind: input, shape index: {}]   ;;  %s259_s1 = inlined_call_operand.hbm [shape: f32[256,128], index: 1, kind: input, shape index: {}]   ;;  %s260_s2 = inlined_call_operand.hbm [shape: f32[8,128], index: 2, kind: output, shape index: {}]  }
   0x1   :  { %8 = vsyncpa [#allocation6], 0 }
   0x2   :  { %9 = vsyncpa [#allocation4], 0  ;;  %s15_s11 = sshll.u32 %s258_s0, 4  ;;  %s229_s12 = smov [#allocation2]   ;;  %s16_s11 = int_to_ptr.hbm [resolvable:$true] %s15_s11 }
   0x3   :  { %s17_s13 = sshll.u32 %s229_s12, 4  ;;  %s25_s16 = sshll.u32 %s259_s1, 4  ;;  %s18_s13 = int_to_ptr.vmem [resolvable:$true] %s17_s13  ;;  %s26_s16 = int_to_ptr.hbm [resolvable:$true] %s25_s16 }
   0x4   :  { %20 = dma.hbm_to_vmem [thread:$0]  %s16_s11, 256, %s18_s13, [#allocation3]  }
   0x5   :  { %s230_s17 = smov [#allocation5]   ;;  %s231_s19 = smov 128  }
   0x6   :  { %s27_s18 = sshll.u32 %s230_s17, 4  ;;  %s232_s20 = smov 8   ;;  %s28_s18 = int_to_ptr.vmem [resolvable:$true] %s27_s18 }
   0x7   :  { %33 = dma.hbm_to_vmem [thread:$0]  %s26_s16, 4096, %s28_s18, [#allocation6], %s231_s19, %s231_s19, %s232_s20  }
   0x8   :  { %223 = dma.done.wait [#allocation3], 256  }
   0x9   :  { %224 = vsyncadd [#allocation3], 4294967040 }
   0xa   :  { %225 = dma.done.wait [#allocation6], 4096  }
   0xb   :  { %226 = vsyncadd [#allocation6], 4294963200  ;;  %v59_v0 = vld [vmem:[#allocation5 + $0x78] sm:$0xff]  ;;  %v58_v2 = vld [vmem:[#allocation5 + $0x70] sm:$0xff]  ;;  %s233_s0 = smov [#allocation7]   ;;  %s135_s23 = sshll.u32 %s260_s2, 4  ;;  %s136_s23 = int_to_ptr.hbm [resolvable:$true] %s135_s23 }
   0xc   :  { %v75_v1 = vld [vmem:[#allocation5 + $0xf8] sm:$0xff]  ;;  %76 = vmatpush.msra.mxu0 %v59_v0  ;;  %v74_v3 = vld [vmem:[#allocation5 + $0xf0] sm:$0xff]  ;;  %v57_v4 = vld [vmem:[#allocation5 + $0x68] sm:$0xff]  ;;  %s133_s1 = sshll.u32 %s233_s0, 4  ;;  %s134_s1 = int_to_ptr.vmem [resolvable:$true] %s133_s1 }
   0xd   :  { %96 = vmatpush.msra.mxu1 %v75_v1  ;;  %v73_v5 = vld [vmem:[#allocation5 + $0xe8] sm:$0xff]  ;;  %v56_v6 = vld [vmem:[#allocation5 + $0x60] sm:$0xff]  ;;  %v55_v8 = vld [vmem:[#allocation5 + $0x58] sm:$0xff] }
   0xe   :  { %77 = vmatpush.msra.mxu0 %v58_v2  ;;  %v72_v7 = vld [vmem:[#allocation5 + $0xe0] sm:$0xff]  ;;  %v71_v9 = vld [vmem:[#allocation5 + $0xd8] sm:$0xff]  ;;  %v54_v10 = vld [vmem:[#allocation5 + $0x50] sm:$0xff] }
   0xf   :  { %97 = vmatpush.msra.mxu1 %v74_v3  ;;  %v70_v11 = vld [vmem:[#allocation5 + $0xd0] sm:$0xff]  ;;  %v53_v12 = vld [vmem:[#allocation5 + $0x48] sm:$0xff]  ;;  %v52_v14 = vld [vmem:[#allocation5 + $0x40] sm:$0xff] }
  0x10   :  { %78 = vmatpush.msra.mxu0 %v57_v4  ;;  %v69_v13 = vld [vmem:[#allocation5 + $0xc8] sm:$0xff]  ;;  %v68_v15 = vld [vmem:[#allocation5 + $0xc0] sm:$0xff]  ;;  %v51_v16 = vld [vmem:[#allocation5 + $0x38] sm:$0xff] }
  0x11   :  { %98 = vmatpush.msra.mxu1 %v73_v5  ;;  %v67_v17 = vld [vmem:[#allocation5 + $0xb8] sm:$0xff]  ;;  %v50_v18 = vld [vmem:[#allocation5 + $0x30] sm:$0xff]  ;;  %v49_v20 = vld [vmem:[#allocation5 + $0x28] sm:$0xff] }
  0x12   :  { %79 = vmatpush.msra.mxu0 %v56_v6  ;;  %v66_v19 = vld [vmem:[#allocation5 + $0xb0] sm:$0xff]  ;;  %v65_v21 = vld [vmem:[#allocation5 + $0xa8] sm:$0xff]  ;;  %v48_v22 = vld [vmem:[#allocation5 + $0x20] sm:$0xff] }
  0x13   :  { %99 = vmatpush.msra.mxu1 %v72_v7  ;;  %v64_v23 = vld [vmem:[#allocation5 + $0xa0] sm:$0xff]  ;;  %v47_v24 = vld [vmem:[#allocation5 + $0x18] sm:$0xff]  ;;  %v46_v26 = vld [vmem:[#allocation5 + $0x10] sm:$0xff] }
  0x14   :  { %80 = vmatpush.msra.mxu0 %v55_v8  ;;  %v63_v25 = vld [vmem:[#allocation5 + $0x98] sm:$0xff]  ;;  %v62_v27 = vld [vmem:[#allocation5 + $0x90] sm:$0xff]  ;;  %v45_v28 = vld [vmem:[#allocation5 + $0x8] sm:$0xff] }
  0x15   :  { %100 = vmatpush.msra.mxu1 %v71_v9  ;;  %v61_v29 = vld [vmem:[#allocation5 + $0x88] sm:$0xff]  ;;  %v44_v30 = vld [vmem:[#allocation5] sm:$0xff]  ;;  %v42_v32 = vld [vmem:[#allocation2] sm:$0xff] }
  0x16   :  { %81 = vmatpush.msra.mxu0 %v54_v10  ;;  %v60_v31 = vld [vmem:[#allocation5 + $0x80] sm:$0xff]  ;;  %v43_v33 = vld [vmem:[#allocation2 + $0x8] sm:$0xff] }
  0x17   :  { %101 = vmatpush.msra.mxu1 %v70_v11 }
  0x18   :  { %82 = vmatpush.msra.mxu0 %v53_v12 }
  0x19   :  { %102 = vmatpush.msra.mxu1 %v69_v13 }
  0x1a   :  { %83 = vmatpush.msra.mxu0 %v52_v14 }
  0x1b   :  { %103 = vmatpush.msra.mxu1 %v68_v15 }
  0x1c   :  { %84 = vmatpush.msra.mxu0 %v51_v16 }
  0x1d   :  { %104 = vmatpush.msra.mxu1 %v67_v17 }
  0x1e   :  { %85 = vmatpush.msra.mxu0 %v50_v18 }
  0x1f   :  { %105 = vmatpush.msra.mxu1 %v66_v19 }
  0x20   :  { %86 = vmatpush.msra.mxu0 %v49_v20 }
  0x21   :  { %106 = vmatpush.msra.mxu1 %v65_v21 }
  0x22   :  { %87 = vmatpush.msra.mxu0 %v48_v22 }
  0x23   :  { %107 = vmatpush.msra.mxu1 %v64_v23 }
  0x24   :  { %88 = vmatpush.msra.mxu0 %v47_v24 }
  0x25   :  { %108 = vmatpush.msra.mxu1 %v63_v25 }
  0x26   :  { %89 = vmatpush.msra.mxu0 %v46_v26 }
  0x27   :  { %109 = vmatpush.msra.mxu1 %v62_v27 }
  0x28   :  { %90 = vmatpush.msra.mxu0 %v45_v28 }
  0x29   :  { %110 = vmatpush.msra.mxu1 %v61_v29 }
  0x2a   :  { %91 = vmatpush.msra.mxu0 %v44_v30 }
  0x2b   :  { %111 = vmatpush.msra.mxu1 %v60_v31  ;;  %92 = vmatmul.f32.vlgmr.msra.gmra.mxu0 %v42_v32 }
  0x2c   :  { %112 = vmatmul.f32.vlgmr.msra.gmra.mxu1 %v43_v33 }
  0xa8   :  { %v93_v34 = vpop.f32.mrf.mxu0 }
  0xa9   :  { %v113_v35 = vpop.f32.mrf.mxu1 }
  0xaa   :  { %v114_v36 = vadd.f32 %v113_v35, %v93_v34 }
  0xac   :  { %120 = vst [vmem:[#allocation7] sm:$0xff] %v114_v36 }
  0xad   :  { %138 = dma.vmem_to_hbm [thread:$0]  %s134_s1, 128, %s136_s23, [#allocation4]  }
  0xae   :  { %227 = dma.done.wait [#allocation4], 128  }
  0xaf   :  { %228 = vsyncadd [#allocation4], 4294967168 }
  0xb0   :  { %143 = vsyncpa [#allocation3], 1 }
  0xb1   :  { %144 = vsyncpa [#allocation6], 1 }
  0xb2   :  { %145 = vsyncpa [#allocation4], 1 }

</bundles_post_ra>
